<compile_context>
chip_gen: v6e
topology: v6e:2x2x1
jax: 0.10.0
libtpu: 0.0.40
codegen_flags: <defaults>
</compile_context>

<pallas_src>
import numpy as np
import jax
import jax.numpy as jnp
from jax.experimental import pallas as pl
from jax.experimental.pallas import tpu as pltpu

LN_EPS = 1e-5       # nn.LayerNorm default
LANE = 128


def _round_up(x, m):
    return ((x + m - 1) // m) * m


def _sublane_mult(dtype):
    """Rows per packed sublane tile: f32 -> 8, bf16 -> 16, int8/fp8 -> 32."""
    itemsize = np.dtype(dtype).itemsize
    return max(8, 8 * (4 // max(itemsize, 1)))


def _vmem_budget_bytes():
    """Derive a per-kernel VMEM budget + explicit limit from the hardware."""
    phys = 64 * 1024 * 1024  # conservative default (v7x per-core VMEM)
    try:
        info = pltpu.get_tpu_info()
        cap = getattr(info, "vmem_capacity_bytes", None)
        if cap:
            phys = int(cap)
    except Exception:
        pass
    limit = int(phys * 0.75)       # headroom for Mosaic internal scratch
    budget = int(limit * 0.85)     # what the tile planner may consume
    return budget, limit


# --------------------------------------------------------------------------
# Kernel
# --------------------------------------------------------------------------
def pooler_kernel(x_ref, gamma_ref, beta_ref, wt_ref, b_ref, o_ref, xn_ref):
    # x_ref:     (TB, D_in)        input rows (any float dtype)
    # gamma_ref: (1, D_in)         LN weight
    # beta_ref:  (1, D_in)         LN bias
    # wt_ref:    (D_in, TN)        pre-transposed, lane-padded weight (bf16)
    # b_ref:     (1, TN)           lane-padded linear bias (f32)
    # o_ref:     (TB, TN)          output tile
    # xn_ref:    (TB, D_in)        VMEM scratch: normalized rows in MXU dtype
    n = pl.program_id(1)

    # LayerNorm once per batch tile; reused across all output-column tiles.
    @pl.when(n == 0)
    def _():
        x = x_ref[...].astype(jnp.float32)
        mean = jnp.mean(x, axis=-1, keepdims=True)
        xc = x - mean
        var = jnp.mean(xc * xc, axis=-1, keepdims=True)
        inv_std = jax.lax.rsqrt(var + LN_EPS)
        # Fold gamma into inv_std -> single mul+add for the normalize.
        scale = inv_std * gamma_ref[...].astype(jnp.float32)
        xn = xc * scale + beta_ref[...].astype(jnp.float32)
        xn_ref[...] = xn.astype(xn_ref.dtype)

    # Linear: bf16 x bf16 MXU matmul with f32 accumulation.
    y = jnp.dot(xn_ref[...], wt_ref[...], preferred_element_type=jnp.float32)
    y = y + b_ref[...].astype(jnp.float32)
    o_ref[...] = y.astype(o_ref.dtype)


# --------------------------------------------------------------------------
# One-time parameter prep (keep OFF the per-call path)
# --------------------------------------------------------------------------
def prepare_pooler_params(gamma, beta, weight, bias, *,
                          mxu_dtype=jnp.bfloat16, lane_align=256):
    """Transpose the PyTorch (D_out, D_in) weight to (D_in, D_out_pad), cast it
    to the MXU-native dtype (bf16 by default) and zero-pad D_out to a
    lane-dense multiple of `lane_align` (256 fills full MXU passes on
    v6e/v7x; also fine on v5e). Returns (gamma2, beta2, w_t, bias_p, d_out)."""
    d_out, d_in = weight.shape
    d_out_pad = max(_round_up(d_out, lane_align), lane_align)
    w_t = jnp.zeros((d_in, d_out_pad), dtype=mxu_dtype)
    w_t = w_t.at[:, :d_out].set(weight.T.astype(mxu_dtype))
    b_p = jnp.zeros((1, d_out_pad), dtype=jnp.float32)
    b_p = b_p.at[:, :d_out].set(bias.reshape(1, d_out).astype(jnp.float32))
    return gamma.reshape(1, d_in), beta.reshape(1, d_in), w_t, b_p, d_out


# --------------------------------------------------------------------------
# Tile planning
# --------------------------------------------------------------------------
def _plan_tiles(B, D_in, D_out_pad, x_dtype, w_dtype, out_dtype, vmem_budget):
    x_it = np.dtype(x_dtype).itemsize
    w_it = np.dtype(w_dtype).itemsize
    o_it = np.dtype(out_dtype).itemsize
    x_sub = _sublane_mult(x_dtype)

    # ---- choose TN (output-column tile) ----
    # Prefer the whole padded output width resident (single buffer); otherwise
    # pick the largest lane-aligned divisor whose double-buffered weight fits.
    candidates = [c for c in range(D_out_pad, LANE - 1, -LANE)
                  if D_out_pad % c == 0]
    tn = None
    for c in candidates:
        bufs = 1 if c == D_out_pad else 2
        if bufs * D_in * c * w_it <= 0.5 * vmem_budget:
            tn = c
            break
    if tn is None:
        tn = candidates[-1]          # best effort: smallest lane-aligned tile
    weight_resident = (tn == D_out_pad)

    # ---- choose TB (batch tile) with an honest footprint model ----
    w_foot = (1 if weight_resident else 2) * D_in * tn * w_it
    fixed = w_foot + 4 * D_in * 4 + 2 * tn * 4     # + gamma/beta/bias
    tb = 2048
    while tb > x_sub:
        foot = (2 * tb * D_in * x_it       # x: double-buffered input
                + 3 * tb * D_in * 4        # f32 LN working set (x, xc, xn)
                + tb * D_in * w_it         # xn scratch in MXU dtype
                + 2 * tb * tn * o_it       # out: double-buffered output
                + tb * tn * 4              # f32 matmul result before cast
                + fixed)
        if foot <= vmem_budget:
            break
        tb //= 2
    tb = max(tb, x_sub)
    tb = min(tb, _round_up(B, x_sub))

    # v7x has 2 TensorCores: if a single tile would cover the whole batch and
    # the batch is big enough, split it so the 'parallel' axis can shard.
    if tb >= B and B >= 2 * x_sub:
        tb = _round_up(-(-B // 2), x_sub)

    return tb, tn, weight_resident


# --------------------------------------------------------------------------
# Forward wrapper
# --------------------------------------------------------------------------
def pooler_forward(x, gamma2, beta2, w_t, bias_p, d_out, *, return_padded=False):
    """x: (B, D_in). Params must come from prepare_pooler_params()."""
    B, D_in = x.shape
    D_out_pad = w_t.shape[1]

    vmem_budget, vmem_limit = _vmem_budget_bytes()
    TB, TN, weight_resident = _plan_tiles(
        B, D_in, D_out_pad, x.dtype, w_t.dtype, x.dtype, vmem_budget)

    num_b = pl.cdiv(B, TB)          # ragged last tile handled by Pallas
    num_n = D_out_pad // TN

    def resident_spec(shape, index_map):
        # Constant-index parameter block: single buffer (no wasted 2nd buffer).
        return pl.BlockSpec(shape, index_map, pipeline_mode=pl.Buffered(1))

    if weight_resident:
        w_spec = resident_spec((D_in, TN), lambda i, n: (0, n))
        b_spec = resident_spec((1, TN), lambda i, n: (0, n))
    else:
        w_spec = pl.BlockSpec((D_in, TN), lambda i, n: (0, n))
        b_spec = pl.BlockSpec((1, TN), lambda i, n: (0, n))

    out_pad = pl.pallas_call(
        pooler_kernel,
        out_shape=jax.ShapeDtypeStruct((B, D_out_pad), x.dtype),
        grid_spec=pltpu.PrefetchScalarGridSpec(
            num_scalar_prefetch=0,
            grid=(num_b, num_n),
            in_specs=[
                pl.BlockSpec((TB, D_in), lambda i, n: (i, 0)),      # x (tiled)
                resident_spec((1, D_in), lambda i, n: (0, 0)),      # gamma
                resident_spec((1, D_in), lambda i, n: (0, 0)),      # beta
                w_spec,                                             # weight
                b_spec,                                             # bias
            ],
            out_specs=pl.BlockSpec((TB, TN), lambda i, n: (i, n)),
            scratch_shapes=[pltpu.VMEM((TB, D_in), w_t.dtype)],     # xn scratch
        ),
        compiler_params=pltpu.CompilerParams(
            dimension_semantics=("parallel", "arbitrary"),
            vmem_limit_bytes=vmem_limit,
        ),
    )(x, gamma2, beta2, w_t, bias_p)

    if return_padded:
        return out_pad                    # consumer accepts lane-padded output
    return out_pad[:, :d_out]


# --------------------------------------------------------------------------
# Reference (matches kernel precision: f32 LN, bf16 MXU operands, f32 accum)
# --------------------------------------------------------------------------
def pooler_reference(x, gamma, beta, weight, bias, *, mxu_dtype=jnp.bfloat16):
    xf = x.astype(jnp.float32)
    mean = jnp.mean(xf, axis=-1, keepdims=True)
    xc = xf - mean
    var = jnp.mean(xc * xc, axis=-1, keepdims=True)
    scale = jax.lax.rsqrt(var + LN_EPS) * gamma.astype(jnp.float32)
    xn = xc * scale + beta.astype(jnp.float32)
    y = jnp.dot(xn.astype(mxu_dtype), weight.T.astype(mxu_dtype),
                preferred_element_type=jnp.float32)
    return y + bias.astype(jnp.float32)


if __name__ == "__main__":
    # NOTE: at these toy shapes a standalone pallas_call is launch-overhead
    # dominated; the kernel is written to scale to realistic B / D_in / D_out.
    key = jax.random.PRNGKey(0)
    B, D_in, D_out = 8, 32, 16

    k_x, k_g, k_b, k_w, k_bias = jax.random.split(key, 5)
    x = jax.random.normal(k_x, (B, D_in), dtype=jnp.float32)
    gamma = 1.0 + 0.1 * jax.random.normal(k_g, (D_in,), dtype=jnp.float32)
    beta = 0.1 * jax.random.normal(k_b, (D_in,), dtype=jnp.float32)
    weight = 0.05 * jax.random.normal(k_w, (D_out, D_in), dtype=jnp.float32)
    bias = 0.05 * jax.random.normal(k_bias, (D_out,), dtype=jnp.float32)

    # One-time parameter prep (transpose, bf16 cast, lane padding).
    gamma2, beta2, w_t, bias_p, d_out_real = prepare_pooler_params(
        gamma, beta, weight, bias)
    gamma2, beta2, w_t, bias_p = jax.block_until_ready(
        (gamma2, beta2, w_t, bias_p))

    out = pooler_forward(x, gamma2, beta2, w_t, bias_p, d_out_real)
    out = jax.block_until_ready(out)

    ref = pooler_reference(x, gamma, beta, weight, bias, mxu_dtype=w_t.dtype)
    assert out.shape == (B, D_out), f"bad shape {out.shape}"
    assert jnp.allclose(out, ref, atol=1e-3, rtol=1e-3), "mismatch vs reference"

    # TODO(synk): nn.Tanh is defined in the module but never applied in
    # forward(); it is intentionally not applied here either.
    print("KERNEL_OK")
</pallas_src>

<mosaic_0001>
module attributes {stable_mosaic.version = 11 : i64} {
  func.func @pooler_kernel(%arg0: i32, %arg1: i32, %arg2: memref<8x32xf32, #tpu.memory_space<vmem>>, %arg3: memref<1x32xf32, #tpu.memory_space<vmem>>, %arg4: memref<1x32xf32, #tpu.memory_space<vmem>>, %arg5: memref<32x256xbf16, #tpu.memory_space<vmem>>, %arg6: memref<1x256xf32, #tpu.memory_space<vmem>>, %arg7: memref<8x256xf32, #tpu.memory_space<vmem>>, %arg8: memref<8x32xbf16, #tpu.memory_space<vmem>>) attributes {dimension_semantics = [#tpu.dimension_semantics<parallel>, #tpu.dimension_semantics<arbitrary>], iteration_bounds = array<i64: 1, 1>, scalar_prefetch = 0 : i64, scratch_operands = 1 : i64, tpu.core_type = #tpu.core_type<tc>, window_params = [{transform_indices = @transform_0, window_bounds = array<i64: 8, 32>}, {pipeline_mode = #tpu.pipeline_mode<synchronous>, transform_indices = @transform_1, window_bounds = array<i64: 1, 32>}, {pipeline_mode = #tpu.pipeline_mode<synchronous>, transform_indices = @transform_2, window_bounds = array<i64: 1, 32>}, {pipeline_mode = #tpu.pipeline_mode<synchronous>, transform_indices = @transform_3, window_bounds = array<i64: 32, 256>}, {pipeline_mode = #tpu.pipeline_mode<synchronous>, transform_indices = @transform_4, window_bounds = array<i64: 1, 256>}, {transform_indices = @transform_5, window_bounds = array<i64: 8, 256>}]} {
    %c0_i32 = arith.constant 0 : i32
    %0 = arith.cmpi eq, %arg1, %c0_i32 : i32
    %1 = arith.extui %0 : i1 to i32
    %c0_i32_0 = arith.constant 0 : i32
    %2 = arith.cmpi ne, %1, %c0_i32_0 : i32
    scf.if %2 {
      %c0_8 = arith.constant 0 : index
      %c0_9 = arith.constant 0 : index
      %10 = vector.load %arg2[%c0_8, %c0_9] : memref<8x32xf32, #tpu.memory_space<vmem>>, vector<8x32xf32>
      %cst_10 = arith.constant dense<0.000000e+00> : vector<8xf32>
      %11 = vector.multi_reduction <add>, %10, %cst_10 [1] : vector<8x32xf32> to vector<8xf32>
      %12 = vector.shape_cast %11 : vector<8xf32> to vector<8x1xf32>
      %cst_11 = arith.constant 3.200000e+01 : f32
      %13 = vector.broadcast %cst_11 : f32 to vector<8x1xf32>
      %14 = arith.divf %12, %13 : vector<8x1xf32>
      %15 = vector.broadcast %14 : vector<8x1xf32> to vector<8x32xf32>
      %16 = arith.subf %10, %15 : vector<8x32xf32>
      %17 = arith.mulf %16, %16 : vector<8x32xf32>
      %cst_12 = arith.constant dense<0.000000e+00> : vector<8xf32>
      %18 = vector.multi_reduction <add>, %17, %cst_12 [1] : vector<8x32xf32> to vector<8xf32>
      %19 = vector.shape_cast %18 : vector<8xf32> to vector<8x1xf32>
      %cst_13 = arith.constant 3.200000e+01 : f32
      %20 = vector.broadcast %cst_13 : f32 to vector<8x1xf32>
      %21 = arith.divf %19, %20 : vector<8x1xf32>
      %cst_14 = arith.constant 9.99999974E-6 : f32
      %22 = vector.broadcast %cst_14 : f32 to vector<8x1xf32>
      %23 = arith.addf %21, %22 : vector<8x1xf32>
      %24 = math.rsqrt %23 : vector<8x1xf32>
      %c0_15 = arith.constant 0 : index
      %c0_16 = arith.constant 0 : index
      %25 = vector.load %arg3[%c0_15, %c0_16] : memref<1x32xf32, #tpu.memory_space<vmem>>, vector<1x32xf32>
      %26 = vector.broadcast %24 : vector<8x1xf32> to vector<8x32xf32>
      %27 = vector.broadcast %25 : vector<1x32xf32> to vector<8x32xf32>
      %28 = arith.mulf %26, %27 : vector<8x32xf32>
      %29 = arith.mulf %16, %28 : vector<8x32xf32>
      %c0_17 = arith.constant 0 : index
      %c0_18 = arith.constant 0 : index
      %30 = vector.load %arg4[%c0_17, %c0_18] : memref<1x32xf32, #tpu.memory_space<vmem>>, vector<1x32xf32>
      %31 = vector.broadcast %30 : vector<1x32xf32> to vector<8x32xf32>
      %32 = arith.addf %29, %31 : vector<8x32xf32>
      %33 = arith.truncf %32 : vector<8x32xf32> to vector<8x32xbf16>
      %c0_19 = arith.constant 0 : index
      %c0_20 = arith.constant 0 : index
      %34 = vector.load %arg8[%c0_19, %c0_20] : memref<8x32xbf16, #tpu.memory_space<vmem>>, vector<8x32xbf16>
      tpu.vector_store %arg8[%c0_19, %c0_20], %33 {strides = array<i32>} : memref<8x32xbf16, #tpu.memory_space<vmem>>, vector<8x32xbf16>,
    } else {
    }
    %c0 = arith.constant 0 : index
    %c0_1 = arith.constant 0 : index
    %3 = vector.load %arg8[%c0, %c0_1] : memref<8x32xbf16, #tpu.memory_space<vmem>>, vector<8x32xbf16>
    %c0_2 = arith.constant 0 : index
    %c0_3 = arith.constant 0 : index
    %4 = vector.load %arg5[%c0_2, %c0_3] : memref<32x256xbf16, #tpu.memory_space<vmem>>, vector<32x256xbf16>
    %cst = arith.constant dense<0.000000e+00> : vector<8x256xf32>
    %5 = tpu.matmul %3, %4, %cst {dimension_numbers = #tpu.dot_dimension_numbers<[1], [0], [0], [1], [0, 0, 1, 1], [], []>} : vector<8x32xbf16>, vector<32x256xbf16>, vector<8x256xf32> -> vector<8x256xf32>
    %c0_4 = arith.constant 0 : index
    %c0_5 = arith.constant 0 : index
    %6 = vector.load %arg6[%c0_4, %c0_5] : memref<1x256xf32, #tpu.memory_space<vmem>>, vector<1x256xf32>
    %7 = vector.broadcast %6 : vector<1x256xf32> to vector<8x256xf32>
    %8 = arith.addf %5, %7 : vector<8x256xf32>
    %c0_6 = arith.constant 0 : index
    %c0_7 = arith.constant 0 : index
    %9 = vector.load %arg7[%c0_6, %c0_7] : memref<8x256xf32, #tpu.memory_space<vmem>>, vector<8x256xf32>
    tpu.vector_store %arg7[%c0_6, %c0_7], %8 {strides = array<i32>} : memref<8x256xf32, #tpu.memory_space<vmem>>, vector<8x256xf32>,
    return
  }
  func.func @transform_0(%arg0: i32, %arg1: i32) -> (i32, i32) {
    %c0_i32 = arith.constant 0 : i32
    %c0_i32_0 = arith.constant 0 : i32
    return %arg0, %c0_i32 : i32, i32
  }
  func.func @transform_1(%arg0: i32, %arg1: i32) -> (i32, i32) {
    %c0_i32 = arith.constant 0 : i32
    %c0_i32_0 = arith.constant 0 : i32
    %c0_i32_1 = arith.constant 0 : i32
    return %c0_i32, %c0_i32_0 : i32, i32
  }
  func.func @transform_2(%arg0: i32, %arg1: i32) -> (i32, i32) {
    %c0_i32 = arith.constant 0 : i32
    %c0_i32_0 = arith.constant 0 : i32
    %c0_i32_1 = arith.constant 0 : i32
    return %c0_i32, %c0_i32_0 : i32, i32
  }
  func.func @transform_3(%arg0: i32, %arg1: i32) -> (i32, i32) {
    %c0_i32 = arith.constant 0 : i32
    %c0_i32_0 = arith.constant 0 : i32
    return %c0_i32, %arg1 : i32, i32
  }
  func.func @transform_4(%arg0: i32, %arg1: i32) -> (i32, i32) {
    %c0_i32 = arith.constant 0 : i32
    %c0_i32_0 = arith.constant 0 : i32
    return %c0_i32, %arg1 : i32, i32
  }
  func.func @transform_5(%arg0: i32, %arg1: i32) -> (i32, i32) {
    %c0_i32 = arith.constant 0 : i32
    return %arg0, %arg1 : i32, i32
  }
}

</mosaic_0001>

<bundles_post_ra>
// kernel: tpu_custom_call.1
= control target key start
LH: loop header
LB: loop body
LE: loop exit
PB: predicated region body
PF: predicated region fallthrough
CT: control target
= control target key end

     0   :  { %10 = vsyncpa [#allocation4], 0  ;;  %s364_s0 = inlined_call_operand.hbm [shape: f32[8,32], index: 0, kind: input, shape index: {}]   ;;  %s365_s1 = inlined_call_operand.vmem [shape: f32[1,32], index: 1, kind: input, shape index: {}]   ;;  %s366_s2 = inlined_call_operand.hbm [shape: f32[1,32], index: 2, kind: input, shape index: {}]   ;;  %s367_s3 = inlined_call_operand.hbm [shape: bf16[32,256], index: 3, kind: input, shape index: {}]   ;;  %s368_s4 = inlined_call_operand.vmem [shape: f32[1,256], index: 4, kind: input, shape index: {}]   ;;  %s369_s5 = inlined_call_operand.hbm [shape: f32[8,256], index: 5, kind: output, shape index: {}]  }
   0x1   :  { %11 = vsyncpa [#allocation7], 0 }
   0x2   :  { %12 = vsyncpa [#allocation5], 0  ;;  %s306_s18 = smov [#allocation6]   ;;  %s307_s20 = smov [#allocation3]  }
   0x3   :  { %s31_s19 = sshll.u32 %s306_s18, 4  ;;  %s19_s21 = sshll.u32 %s307_s20, 4  ;;  %s32_s19 = int_to_ptr.vmem [resolvable:$true] %s31_s19  ;;  %s20_s21 = int_to_ptr.vmem [resolvable:$true] %s19_s21 }
   0x4   :  { %s228_s22 = scalar_lea.vmem %s32_s19, 16  ;;  %s232_s23 = scalar_lea.vmem %s32_s19, 32 }
   0x5   :  { %p229_p0 = scmp.ne.s32.totalorder %s32_s19, %s228_s22  ;;  %p233_p1 = scmp.lt.s32.totalorder %s32_s19, %s32_s19 }
   0x6   :  { %p234_p2 = scmp.lt.s32.totalorder %s232_s23, %s228_s22 }
   0x8   :  { %p235_p3 = por %p234_p2, %p233_p1 }
   0xa   :  { %p236_p4 = pnand %p235_p3, %p229_p0 }
   0xc   :  { %239 = shalt.err (!%p236_p4)
}
   0xd   :  { %34 = dma.hbm_to_vmem [thread:$0]  %s366_s2, 16, %s32_s19, [#allocation7]  }
   0xe   :  { %s248_s26 = scalar_lea.vmem %s20_s21, 128  ;;  %p253_p6 = scmp.lt.s32.totalorder %s20_s21, %s20_s21 }
   0xf   :  { %p249_p5 = scmp.ne.s32.totalorder %s20_s21, %s248_s26  ;;  %p254_p7 = scmp.lt.s32.totalorder %s248_s26, %s248_s26 }
  0x11   :  { %p255_p8 = por %p254_p7, %p253_p6 }
  0x13   :  { %p256_p9 = pnand %p255_p8, %p249_p5 }
  0x15   :  { %259 = shalt.err (!%p256_p9)
}
  0x16   :  { %22 = dma.hbm_to_vmem [thread:$0]  %s364_s0, 128, %s20_s21, [#allocation4]  }
  0x17   :  { %s308_s29 = smov [#allocation8]  }
  0x18   :  { %s40_s30 = sshll.u32 %s308_s29, 4  ;;  %s41_s30 = int_to_ptr.vmem [resolvable:$true] %s40_s30 }
  0x19   :  { %s268_s6 = scalar_lea.vmem %s41_s30, 512  ;;  %p273_p11 = scmp.lt.s32.totalorder %s41_s30, %s41_s30 }
  0x1a   :  { %p269_p10 = scmp.ne.s32.totalorder %s41_s30, %s268_s6  ;;  %p274_p12 = scmp.lt.s32.totalorder %s268_s6, %s268_s6 }
  0x1c   :  { %p275_p13 = por %p274_p12, %p273_p11 }
  0x1e   :  { %p276_p0 = pnand %p275_p13, %p269_p10 }
  0x20   :  { %279 = shalt.err (!%p276_p0)
}
  0x21   :  { %s309_s2 = smov 128   ;;  %s310_s7 = smov 8  }
  0x22   :  { %46 = dma.hbm_to_vmem [thread:$0]  %s367_s3, 512, %s41_s30, [#allocation7], %s309_s2, %s309_s2, %s310_s7  }
  0x23   :  { %300 = dma.done.wait [#allocation4], 128  }
  0x24   :  { %301 = vsyncadd [#allocation4], 4294967168 }
  0x25   :  { %302 = dma.done.wait [#allocation7], 528  }
  0x26   :  { %303 = vsyncadd [#allocation7], 4294966768  ;;  %vm64_vm0 = vcmask 261120   ;;  %v63_v0 = vld [vmem:[#allocation3] sm:$0xff]  ;;  %v215_v9 = vld [vmem:[#allocation8 + $0x4] ss:$8 sps:$4 sm:$0xff]   ;;  %v105_v23 = vlaneseq }
  0x27   :  { %v65_v1 = vsel %vm64_vm0, %v63_v0, 0.0  ;;  %v212_v7 = vld [vmem:[#allocation8 + $0x14] ss:$8 sps:$4 sm:$0xff]   ;;  %v214_v8 = vld [vmem:[#allocation8 + $0x10] ss:$8 sps:$4 sm:$0xff]   ;;  %v311_v11 = vmov 0  }
  0x28   :  { %66 = vadd.xlane.f32.xlu0 %v65_v1  ;;  %151 = vmatprep.subr.bf16.mxu0 %v212_v7  ;;  %v217_v10 = vld [vmem:[#allocation8] ss:$8 sps:$4 sm:$0xff]   ;;  %v198_v15 = vld [vmem:[%s365_s1] ss:$0 sm:$0xff]  ;;  %v199_v18 = vld [vmem:[#allocation6] ss:$0 sm:$0xff] }
  0x29   :  { %152 = vmatpush1.bf16.msra.mxu0 %v214_v8  ;;  %171 = vmatprep.mubr.bf16.mxu0 %v311_v11  ;;  %vm96_vm1 = vcmask 257024   ;;  %v106_v24 = vshrl.u32 %v105_v23, 7  ;;  %v103_v26 = vld [vmem:[%s368_s4] sm:$0x3]  ;;  %s312_s1 = smov [#allocation9]  }
  0x2a   :  { %153 = vmatprep.subr.bf16.mxu0 %v215_v9  ;;  %s188_s12 = sshll.u32 %s312_s1, 4  ;;  %s189_s12 = int_to_ptr.vmem [resolvable:$true] %s188_s12 }
  0x2b   :  { %v107_v25 = vsub.s32 0, %v106_v24  ;;  %v111_v27 = vsub.s32 1, %v106_v24  ;;  %s280_s13 = scalar_lea.vmem %s189_s12, 256  ;;  %p285_p2 = scmp.lt.s32.totalorder %s189_s12, %s189_s12 }
  0x2c   :  { %p281_p1 = scmp.ne.s32.totalorder %s189_s12, %s280_s13  ;;  %p286_p3 = scmp.lt.s32.totalorder %s280_s13, %s280_s13 }
  0x2d   :  { %154 = vmatpush1.bf16.msra.mxu0 %v217_v10  ;;  %v108_v28 = vrot.slane %v103_v26, %v107_v25  ;;  %v112_v29 = vrot.slane %v103_v26, %v111_v27 }
  0x2e   :  { %p287_p4 = por %p286_p3, %p285_p2 }
  0x30   :  { %p288_p5 = pnand %p287_p4, %p281_p1 }
  0xb1   :  { %v67_v2 = vpop.xlane.xlu0 %66 }
  0xb2   :  { %v69_v3 = vmul.f32 0.03125, %v67_v2 }
  0xb4   :  { %v70_v4 = vsub.f32 %v63_v0, %v69_v3 }
  0xb6   :  { %v71_v5 = vmul.f32 %v70_v4, %v70_v4 }
  0xb8   :  { %v72_v6 = vsel %vm64_vm0, %v71_v5, 0.0 }
  0xb9   :  { %73 = vadd.xlane.f32.xlu0 %v72_v6 }
 0x142   :  { %v74_v12 = vpop.xlane.xlu0 %73 }
 0x143   :  { %v75_v13 = vmul.f32 0.03125, %v74_v12 }
 0x145   :  { %v76_v14 = vadd.f32 1e-05, %v75_v13 }
 0x147   :  { %218 = vrsqrt.f32 %v76_v14 }
 0x154   :  { %v219_v16 = vpop.eup %218 }
 0x155   :  { %v85_v17 = vmul.f32 %v219_v16, %v198_v15 }
 0x157   :  { %v86_v19 = vmul.f32 %v85_v17, %v70_v4 }
 0x159   :  { %v94_v20 = vadd.f32 %v199_v18, %v86_v19 }
 0x15b   :  { %v95_v21 = vpack.c.bf16 %v94_v20, %v94_v20 }
 0x15d   :  { %97 = vst.msk [vmem:[#allocation2] sm:$0xf] %vm96_vm1, %v95_v21 }
 0x164   :  { %v98_v22 = vld [vmem:[#allocation2] sm:$0xf] }
 0x165   :  { %204 = vmatmul.mubr.msk.bf16.vlgmr.msra.gmra.mxu0 %vm64_vm0, %v98_v22 }
 0x225   :  { %v173_v30 = vpop.f32.mrf.mxu0 }
 0x226   :  { %v174_v31 = vadd.f32 %v173_v30, %v108_v28 }
 0x227   :  { %v175_v32 = vpop.f32.mrf.mxu0 }
 0x228   :  { %180 = vst [vmem:[#allocation9] sm:$0xff] %v174_v31  ;;  %v176_v33 = vadd.f32 %v175_v32, %v112_v29 }
 0x229   :  { %v177_v34 = vpop.f32.mrf.mxu0 }
 0x22a   :  { %181 = vst [vmem:[#allocation9 + $0x8] sm:$0xff] %v176_v33 }
 0x22b   :  { %v178_v35 = vpop.f32.mrf.mxu0 }
 0x22c   :  { %291 = shalt.err (!%p288_p5)
}
 0x22d   :  { %191 = dma.vmem_to_hbm [thread:$0]  %s189_s12, 256, %s369_s5, [#allocation5]  }
 0x22e   :  { %304 = dma.done.wait [#allocation5], 256  }
 0x22f   :  { %305 = vsyncadd [#allocation5], 4294967040 }
 0x230   :  { %195 = vsyncpa [#allocation4], 1 }
 0x231   :  { %196 = vsyncpa [#allocation7], 1 }
 0x232   :  { %197 = vsyncpa [#allocation5], 1 }

</bundles_post_ra>
